<compile_context>
chip_gen: v5e
topology: v5e:2x2
jax: 0.10.0
libtpu: 0.0.40
codegen_flags: <defaults>
</compile_context>

<pallas_src>
import jax
import jax.numpy as jnp
from jax.experimental import pallas as pl
from jax.experimental.pallas import tpu as pltpu


def _rewire_kernel(thresh, n_pad, tm):
    def kernel(x_ref, out_ref):
        i = pl.program_id(0)
        row0 = pl.multiple_of(i * tm, tm)
        lhs = x_ref[pl.ds(row0, tm), :]                       # [TM, D] rows of this tile

        # sim tile = X[rows] @ X.T, contracting the feature axis of BOTH operands
        # (no materialized transpose; f32 accumulation on the MXU).
        s = jax.lax.dot_general(
            lhs, x_ref[...],
            dimension_numbers=(((1,), (1,)), ((), ())),
            preferred_element_type=jnp.float32,
        )                                                     # [TM, N] f32

        # F.normalize(s, dim=1): row / max(||row||_2, 1e-12)
        # == row * rsqrt(max(sum(row^2), 1e-24)); rsqrt goes to the EUP slot.
        sumsq = jnp.sum(s * s, axis=1, keepdims=True)         # [TM, 1]
        inv = jax.lax.rsqrt(jnp.maximum(sumsq, 1e-24))
        sn = s * inv

        # Zero-diagonal + threshold, fused into the single store.  Mask built
        # from a (TM,1) row vector and a (1,N) column iota via broadcast compare
        # instead of two full (TM,N) int32 planes.
        row = jax.lax.broadcasted_iota(jnp.int32, (tm, 1), 0) + i * tm
        col = jax.lax.broadcasted_iota(jnp.int32, (1, n_pad), 1)
        keep = (row != col) & (sn > thresh)
        out_ref[...] = jnp.where(keep, sn, 0.0).astype(out_ref.dtype)

    return kernel


def _round_down(x, m):
    return (x // m) * m


def _mxu_align(tm):
    # MXU-friendly M panel: multiples of 256 (v6e/v7x systolic height), else 128
    # (v5e), else sublane-8 minimum.
    if tm >= 256:
        return _round_down(tm, 256)
    if tm >= 128:
        return _round_down(tm, 128)
    return max(8, _round_down(tm, 8))


def _vmem_limit_bytes():
    try:
        cap = pltpu.get_tpu_info().vmem_capacity_bytes
    except Exception:
        cap = 64 * 1024 * 1024          # conservative: assume 64 MiB/TC (v7x-class)
    if cap <= 64 * 1024 * 1024:
        return 40 * 1024 * 1024         # v7x: headroom for resident X + scratch
    return 96 * 1024 * 1024             # v5e / v6e: 128 MiB physical


def rewire_old(similarity, adjacency=None, *, thresh=0.7, tm=None,
               compute_dtype=None, out_dtype=jnp.float32):
    """Pallas equivalent of Rewire_old.forward (`adjacency` unused, as in PyTorch)."""
    n, d = similarity.shape
    in_dtype = jnp.dtype(compute_dtype) if compute_dtype is not None else jnp.dtype(jnp.float32)
    x = similarity.astype(in_dtype)

    vmem_limit = _vmem_limit_bytes()
    in_bytes = in_dtype.itemsize
    out_bytes = jnp.dtype(out_dtype).itemsize
    x_resident = n * d * in_bytes                     # single-buffered resident X
    margin = 2 * 1024 * 1024                          # internal scratch headroom
    # per output row: 2x double-buffered out slab + ~3x f32 temporaries (s, sn, mask)
    bytes_per_row = 2 * n * out_bytes + 3 * n * 4

    if tm is None:
        avail = vmem_limit - x_resident - margin
        if avail < 8 * bytes_per_row:
            # TODO(synk): add a K-tiled (feature-axis grid + f32 VMEM accumulator)
            # variant for problems whose resident X / output slab exceed VMEM.
            raise ValueError(
                f"Rewire_old: N={n}, D={d} exceeds the per-core VMEM budget "
                f"({vmem_limit} bytes); a K-tiled variant is required.")
        tm = min(avail // bytes_per_row, 1024)
        tm = _mxu_align(tm)
        if n >= 16:                                   # keep >= 2 row tiles (megacore)
            tm = min(tm, _mxu_align(max(n // 2, 8)))
    tm = max(8, min(int(tm), max(n, 8)))

    # Pad rows to a multiple of TM so the in-kernel pl.ds row slice never runs OOB.
    n_pad = max(-(-n // tm) * tm, 8)
    if n_pad != n:
        x = jnp.pad(x, ((0, n_pad - n), (0, 0)))

    # Resident full-X spec: single buffer (its block index never changes).
    try:
        x_spec = pl.BlockSpec((n_pad, d), lambda i: (0, 0),
                              pipeline_mode=pl.Buffered(1))
    except TypeError:  # older API without pipeline_mode kwarg
        x_spec = pl.BlockSpec((n_pad, d), lambda i: (0, 0))

    cost = pl.CostEstimate(
        flops=2 * n_pad * n_pad * d,
        transcendentals=n_pad,
        bytes_accessed=n_pad * d * in_bytes + n_pad * n_pad * out_bytes,
    )

    out = pl.pallas_call(
        _rewire_kernel(float(thresh), n_pad, tm),
        out_shape=jax.ShapeDtypeStruct((n_pad, n_pad), out_dtype),
        grid=(n_pad // tm,),
        in_specs=[x_spec],
        # full N in the lane dim: lane-dense stores + exact row norms per tile
        out_specs=pl.BlockSpec((tm, n_pad), lambda i: (i, 0)),
        compiler_params=pltpu.CompilerParams(
            dimension_semantics=("parallel",),     # shard row tiles across TCs on v7x
            vmem_limit_bytes=vmem_limit,
        ),
        cost_estimate=cost,
    )(x)

    if n_pad != n:
        out = out[:n, :n]
    return out


def _reference(similarity, thresh=0.7):
    s = similarity @ similarity.T
    norm = jnp.maximum(jnp.sqrt(jnp.sum(s * s, axis=1, keepdims=True)), 1e-12)
    sn = s / norm
    sn = sn * (1.0 - jnp.eye(s.shape[0], dtype=s.dtype))
    return jnp.where(sn > thresh, sn, 0.0)


if __name__ == "__main__":
    key = jax.random.PRNGKey(0)
    k1, k2 = jax.random.split(key)

    # Small node-similarity problem: 128 nodes, 32-dim features.
    N, D = 128, 32
    similarity = jax.random.normal(k1, (N, D), dtype=jnp.float32)
    adjacency = (jax.random.uniform(k2, (N, N)) > 0.5).astype(jnp.float32)  # unused

    out = rewire_old(similarity, adjacency, thresh=0.7)   # heuristic picks TM=64 -> 2 tiles
    out = jax.block_until_ready(out)

    ref = _reference(similarity, thresh=0.7)
    assert out.shape == (N, N)
    assert jnp.allclose(out, ref, atol=1e-5, rtol=1e-5)

    print("KERNEL_OK")
</pallas_src>

<mosaic_0001>
module attributes {stable_mosaic.version = 11 : i64} {
  func.func @kernel(%arg0: i32, %arg1: memref<128x32xf32, #tpu.memory_space<vmem>>, %arg2: memref<64x128xf32, #tpu.memory_space<vmem>>) attributes {dimension_semantics = [#tpu.dimension_semantics<parallel>], iteration_bounds = array<i64: 2>, scalar_prefetch = 0 : i64, scratch_operands = 0 : i64, tpu.core_type = #tpu.core_type<tc>, window_params = [{pipeline_mode = #tpu.pipeline_mode<synchronous>, transform_indices = @transform_0, window_bounds = array<i64: 128, 32>}, {transform_indices = @transform_1, window_bounds = array<i64: 64, 128>}]} {
    %c64_i32 = arith.constant 64 : i32
    %0 = arith.muli %arg0, %c64_i32 : i32
    %1 = tpu.assume_multiple %0, 64 : i32
    %2 = arith.index_cast %1 : i32 to index
    %c0 = arith.constant 0 : index
    %3 = vector.load %arg1[%2, %c0] : memref<128x32xf32, #tpu.memory_space<vmem>>, vector<64x32xf32>
    %c0_0 = arith.constant 0 : index
    %c0_1 = arith.constant 0 : index
    %4 = vector.load %arg1[%c0_0, %c0_1] : memref<128x32xf32, #tpu.memory_space<vmem>>, vector<128x32xf32>
    %cst = arith.constant dense<0.000000e+00> : vector<64x128xf32>
    %5 = tpu.matmul %3, %4, %cst {dimension_numbers = #tpu.dot_dimension_numbers<[1], [1], [0], [0], [0, 0, 1, 0], [], []>} : vector<64x32xf32>, vector<128x32xf32>, vector<64x128xf32> -> vector<64x128xf32>
    %6 = arith.mulf %5, %5 : vector<64x128xf32>
    %cst_2 = arith.constant dense<0.000000e+00> : vector<64xf32>
    %7 = vector.multi_reduction <add>, %6, %cst_2 [1] : vector<64x128xf32> to vector<64xf32>
    %8 = vector.shape_cast %7 : vector<64xf32> to vector<64x1xf32>
    %cst_3 = arith.constant 1.000000e-24 : f32
    %9 = vector.broadcast %cst_3 : f32 to vector<64x1xf32>
    %10 = arith.maximumf %8, %9 : vector<64x1xf32>
    %11 = math.rsqrt %10 : vector<64x1xf32>
    %12 = vector.broadcast %11 : vector<64x1xf32> to vector<64x128xf32>
    %13 = arith.mulf %5, %12 : vector<64x128xf32>
    %14 = tpu.iota {dimensions = array<i32: 0>} : vector<64x1xi32>
    %c64_i32_4 = arith.constant 64 : i32
    %15 = arith.muli %arg0, %c64_i32_4 : i32
    %16 = vector.broadcast %15 : i32 to vector<64x1xi32>
    %17 = arith.addi %14, %16 : vector<64x1xi32>
    %18 = tpu.iota {dimensions = array<i32: 1>} : vector<1x128xi32>
    %19 = vector.broadcast %17 : vector<64x1xi32> to vector<64x128xi32>
    %20 = vector.broadcast %18 : vector<1x128xi32> to vector<64x128xi32>
    %21 = arith.cmpi ne, %19, %20 : vector<64x128xi32>
    %cst_5 = arith.constant 0.699999988 : f32
    %22 = vector.broadcast %cst_5 : f32 to vector<64x128xf32>
    %23 = arith.cmpf ogt, %13, %22 : vector<64x128xf32>
    %24 = arith.andi %21, %23 : vector<64x128xi1>
    %cst_6 = arith.constant 0.000000e+00 : f32
    %25 = vector.broadcast %cst_6 : f32 to vector<64x128xf32>
    %26 = arith.select %24, %13, %25 : vector<64x128xi1>, vector<64x128xf32>
    %c0_7 = arith.constant 0 : index
    %c0_8 = arith.constant 0 : index
    %27 = vector.load %arg2[%c0_7, %c0_8] : memref<64x128xf32, #tpu.memory_space<vmem>>, vector<64x128xf32>
    tpu.vector_store %arg2[%c0_7, %c0_8], %26 {strides = array<i32>} : memref<64x128xf32, #tpu.memory_space<vmem>>, vector<64x128xf32>,
    return
  }
  func.func @transform_0(%arg0: i32) -> (i32, i32) {
    %c0_i32 = arith.constant 0 : i32
    %c0_i32_0 = arith.constant 0 : i32
    %c0_i32_1 = arith.constant 0 : i32
    return %c0_i32, %c0_i32_0 : i32, i32
  }
  func.func @transform_1(%arg0: i32) -> (i32, i32) {
    %c0_i32 = arith.constant 0 : i32
    %c0_i32_0 = arith.constant 0 : i32
    return %arg0, %c0_i32 : i32, i32
  }
}

</mosaic_0001>

<bundles_post_ra>
// kernel: tpu_custom_call.1
= control target key start
LH: loop header
LB: loop body
LE: loop exit
PB: predicated region body
PF: predicated region fallthrough
CT: control target
= control target key end

     0   :  { %6 = vsyncpa [#allocation3], 0  ;;  %s1111_s0 = inlined_call_operand.vmem [shape: f32[128,32], index: 0, kind: input, shape index: {}]   ;;  %s1112_s1 = inlined_call_operand.hbm [shape: f32[128,128], index: 1, kind: output, shape index: {}]  }
   0x1   :  { %8 = vsyncpa [#allocation3 + $0x1], 0  ;;  %s700_s6 = smov 0   ;;  %s702_s7 = smov 0  }
   0x2   :  { %s704_s8 = smov 0   ;;  %s706_s9 = smov 0  }
   0x3 LB: > { %s483_s10 = sadd.s32 4294967295, %s686_s9   ;;  %s484_s11 = sadd.s32 4294967294, %s686_s9   ;;  %s686_s9 = sphi %s706_s9, %s1118_s9   ;;  %s682_s8 = sphi %s704_s8, %s1117_s8   ;;  %s678_s7 = sphi %s702_s7, %s1116_s7   ;;  %s674_s6 = sphi %s700_s6, %s1115_s6  }
   0x4   : > { %s723_s12 = sadd.s32 1, %s686_s9   ;;  %s42_s13 = sadd.s32 1, %s682_s8 }
   0x5   : > { %s39_s14 = ssub.s32 %s686_s9, %s723_s12  ;;  %p52_p0 = scmp.ne.s32.totalorder %s682_s8, %s678_s7 }
   0x6   : > { %p40_p1 = scmp.eq.s32.totalorder %s39_s14, 0  ;;  %p53_p2 = scmp.eq.s32.totalorder %s483_s10, 1 }
   0x7   : > { %p58_p3 = scmp.ne.s32.totalorder %s678_s7, %s674_s6  ;;  %p59_p4 = scmp.eq.s32.totalorder %s484_s11, 1 }
   0x8   : > { %s735_s15 = scalar_select %p40_p1, %s682_s8, %s42_s13  }
   0x9   : > { %p737_p5 = por %p53_p2, %p52_p0  ;;  %p741_p6 = por %p59_p4, %p58_p3 }
   0xa   : > { %p486_p7 = scmp.ge.s32.totalorder %s686_s9, 1  ;;  %p80_p8 = scmp.lt.s32.totalorder %s686_s9, 3 }
   0xc   : > { %p81_p9 = pnand %p486_p7, %p80_p8 }
   0xd   : > { %s850_s28 = sshll.u32 (!%p81_p9), %s483_s10, 6  ;;  %s92_s10 = sand.u32 (!%p81_p9), 1, %s678_s7  }
   0xe   : > { %84 = sbr.rel (%p81_p9) target bundleno = 375 (0x177), region = 24  ;;  %s97_s4 = scalar_lea.vmem (!%p81_p9), %s1111_s0, %s850_s28 }
   0xf   : > { %s972_s5 = sshll.u32 (!%p81_p9), %s92_s10, 6  ;;  %s428_s18 = scalar_lea.hbm (!%p81_p9), %s1112_s1, %s850_s28 }
  0x10   : > { %s1005_s11 = scalar_lea.vmem (!%p81_p9), [#allocation2], %s972_s5  ;;  %s1073_s19 = sshll.u32 (!%p81_p9), %s428_s18, 4  ;;  %s432_s19 = int_to_ptr.hbm [resolvable:$true] %s1073_s19 }
  0x11   : > { %s429_s20 = sshll.u32 (!%p81_p9), %s1005_s11, 4  ;;  %s417_s21 = scalar_lea.sflag (!%p81_p9), [#allocation3], %s92_s10  ;;  %s430_s20 = int_to_ptr.vmem [resolvable:$true] %s429_s20 }
  0x12   : > { %s638_s22 = sshra.s32 (!%p81_p9), %s432_s19, 4  ;;  %s644_s26 = scalar_lea.hbm (!%p81_p9), %s1112_s1, 128  ;;  %s639_s22 = int_to_ptr.hbm [resolvable:$true] %s638_s22 }
  0x13   : > { %v121_v0 = vld [vmem:[%s1111_s0 + $0x78] sm:$0xff]  ;;  %vm122_vm0 = vcmask 261120   ;;  %v120_v1 = vld [vmem:[%s1111_s0 + $0x70] sm:$0xff]  ;;  %v119_v2 = vld [vmem:[%s1111_s0 + $0x68] sm:$0xff]  ;;  %v356_v40 = vlaneseq  ;;  %v911_v47 = vstv %s850_s28  ;;  %s640_s23 = scalar_lea.hbm %s639_s22, 64  ;;  %p645_p13 = scmp.lt.s32.totalorder %s639_s22, %s1112_s1 }
  0x14   : > { %489 = vmatpush.xpose.msk.msra.mxu0 %vm122_vm0, %v121_v0  ;;  %519 = vmatpush.xpose.msk.msra.mxu1 %vm122_vm0, %v121_v0  ;;  %v118_v3 = vld [vmem:[%s1111_s0 + $0x60] sm:$0xff]  ;;  %v117_v4 = vld [vmem:[%s1111_s0 + $0x58] sm:$0xff]  ;;  %v116_v5 = vld [vmem:[%s1111_s0 + $0x50] sm:$0xff]  ;;  %p641_p10 = scmp.ne.s32.totalorder %s639_s22, %s640_s23  ;;  %p646_p0 = scmp.lt.s32.totalorder %s644_s26, %s640_s23 }
  0x15   : > { %520 = vmatpush.xpose.msk.msra.mxu2 %vm122_vm0, %v121_v0  ;;  %521 = vmatpush.xpose.msk.msra.mxu3 %vm122_vm0, %v121_v0  ;;  %v115_v6 = vld [vmem:[%s1111_s0 + $0x48] sm:$0xff]  ;;  %v114_v7 = vld [vmem:[%s1111_s0 + $0x40] sm:$0xff]  ;;  %v113_v8 = vld [vmem:[%s1111_s0 + $0x38] sm:$0xff]  ;;  %v907_v43 = vshrl.u32 %v356_v40, 7  ;;  %v918_v54 = vand.u32 127, %v356_v40 }
  0x16   : > { %v112_v9 = vld [vmem:[%s1111_s0 + $0x30] sm:$0xff]  ;;  %v111_v10 = vld [vmem:[%s1111_s0 + $0x28] sm:$0xff]  ;;  %v110_v11 = vld [vmem:[%s1111_s0 + $0x20] sm:$0xff]  ;;  %p642_p11 = pnand %p641_p10, %p737_p5  ;;  %p647_p1 = por %p646_p0, %p645_p13 }
  0x17   : > { %v109_v12 = vld [vmem:[%s1111_s0 + $0x18] sm:$0xff]  ;;  %v108_v13 = vld [vmem:[%s1111_s0 + $0x10] sm:$0xff]  ;;  %v107_v14 = vld [vmem:[%s1111_s0 + $0x8] sm:$0xff]  ;;  %v359_v46 = vadd.s32 16, %v907_v43  ;;  %v926_v59 = vadd.s32 %v911_v47, %v907_v43  ;;  %v361_v60 = vadd.s32 32, %v907_v43  ;;  %v360_v62 = vadd.s32 24, %v907_v43 }
  0x18   : > { %490 = vmatpush.xpose.msk.msra.mxu0 %vm122_vm0, %v120_v1  ;;  %522 = vmatpush.xpose.msk.msra.mxu1 %vm122_vm0, %v120_v1  ;;  %v106_v15 = vld [vmem:[%s1111_s0] sm:$0xff]  ;;  %v100_v17 = vld [vmem:[%s97_s4 + $0x10] sm:$0xff]  ;;  %v99_v20 = vld [vmem:[%s97_s4 + $0x8] sm:$0xff]  ;;  %v358_v63 = vadd.s32 8, %v907_v43  ;;  %p643_p12 = pneg %p642_p11 }
  0x19   : > { %523 = vmatpush.xpose.msk.msra.mxu2 %vm122_vm0, %v120_v1  ;;  %524 = vmatpush.xpose.msk.msra.mxu3 %vm122_vm0, %v120_v1  ;;  %v98_v16 = vld [vmem:[%s97_s4] sm:$0xff]  ;;  %v104_v19 = vld [vmem:[%s97_s4 + $0x30] sm:$0xff]  ;;  %v101_v21 = vld [vmem:[%s97_s4 + $0x18] sm:$0xff]  ;;  %v916_v53 = vadd.s32 %v911_v47, %v359_v46  ;;  %vm376_vm2 = vcmp.ne.s32.totalorder %v926_v59, %v918_v54 }
  0x1a   : > { %v102_v18 = vld [vmem:[%s97_s4 + $0x20] sm:$0xff]  ;;  %v103_v22 = vld [vmem:[%s97_s4 + $0x28] sm:$0xff]  ;;  %v105_v23 = vld [vmem:[%s97_s4 + $0x38] sm:$0xff]  ;;  %p648_p2 = pnand %p647_p1, %p643_p12 }
  0x1b   : > { %vm378_vm1 = vcmp.ne.s32.totalorder %v916_v53, %v918_v54 }
  0x1c   : > { %491 = vmatpush.xpose.msk.msra.mxu0 %vm122_vm0, %v119_v2  ;;  %525 = vmatpush.xpose.msk.msra.mxu1 %vm122_vm0, %v119_v2 }
  0x1d   : > { %526 = vmatpush.xpose.msk.msra.mxu2 %vm122_vm0, %v119_v2  ;;  %527 = vmatpush.xpose.msk.msra.mxu3 %vm122_vm0, %v119_v2 }
  0x20   : > { %492 = vmatpush.xpose.msk.msra.mxu0 %vm122_vm0, %v118_v3  ;;  %528 = vmatpush.xpose.msk.msra.mxu1 %vm122_vm0, %v118_v3 }
  0x21   : > { %529 = vmatpush.xpose.msk.msra.mxu2 %vm122_vm0, %v118_v3  ;;  %530 = vmatpush.xpose.msk.msra.mxu3 %vm122_vm0, %v118_v3 }
  0x24   : > { %493 = vmatpush.xpose.msk.msra.mxu0 %vm122_vm0, %v117_v4  ;;  %531 = vmatpush.xpose.msk.msra.mxu1 %vm122_vm0, %v117_v4 }
  0x25   : > { %532 = vmatpush.xpose.msk.msra.mxu2 %vm122_vm0, %v117_v4  ;;  %533 = vmatpush.xpose.msk.msra.mxu3 %vm122_vm0, %v117_v4  ;;  %v939_v4 = vadd.s32 %v911_v47, %v361_v60 }
  0x27   : > { %vm380_vm9 = vcmp.ne.s32.totalorder %v939_v4, %v918_v54 }
  0x28   : > { %494 = vmatpush.xpose.msk.msra.mxu0 %vm122_vm0, %v116_v5  ;;  %534 = vmatpush.xpose.msk.msra.mxu1 %vm122_vm0, %v116_v5 }
  0x29   : > { %535 = vmatpush.xpose.msk.msra.mxu2 %vm122_vm0, %v116_v5  ;;  %536 = vmatpush.xpose.msk.msra.mxu3 %vm122_vm0, %v116_v5  ;;  %v942_v5 = vadd.s32 %v911_v47, %v360_v62 }
  0x2b   : > { %vm379_vm11 = vcmp.ne.s32.totalorder %v942_v5, %v918_v54 }
  0x2c   : > { %495 = vmatpush.xpose.msk.msra.mxu0 %vm122_vm0, %v115_v6  ;;  %537 = vmatpush.xpose.msk.msra.mxu1 %vm122_vm0, %v115_v6 }
  0x2d   : > { %538 = vmatpush.xpose.msk.msra.mxu2 %vm122_vm0, %v115_v6  ;;  %539 = vmatpush.xpose.msk.msra.mxu3 %vm122_vm0, %v115_v6  ;;  %v945_v6 = vadd.s32 %v911_v47, %v358_v63 }
  0x30   : > { %496 = vmatpush.xpose.msk.msra.mxu0 %vm122_vm0, %v114_v7  ;;  %540 = vmatpush.xpose.msk.msra.mxu1 %vm122_vm0, %v114_v7 }
  0x31   : > { %541 = vmatpush.xpose.msk.msra.mxu2 %vm122_vm0, %v114_v7  ;;  %542 = vmatpush.xpose.msk.msra.mxu3 %vm122_vm0, %v114_v7 }
  0x34   : > { %497 = vmatpush.xpose.msk.msra.mxu0 %vm122_vm0, %v113_v8  ;;  %543 = vmatpush.xpose.msk.msra.mxu1 %vm122_vm0, %v113_v8 }
  0x35   : > { %544 = vmatpush.xpose.msk.msra.mxu2 %vm122_vm0, %v113_v8  ;;  %545 = vmatpush.xpose.msk.msra.mxu3 %vm122_vm0, %v113_v8 }
  0x38   : > { %498 = vmatpush.xpose.msk.msra.mxu0 %vm122_vm0, %v112_v9  ;;  %546 = vmatpush.xpose.msk.msra.mxu1 %vm122_vm0, %v112_v9 }
  0x39   : > { %547 = vmatpush.xpose.msk.msra.mxu2 %vm122_vm0, %v112_v9  ;;  %548 = vmatpush.xpose.msk.msra.mxu3 %vm122_vm0, %v112_v9 }
  0x3c   : > { %499 = vmatpush.xpose.msk.msra.mxu0 %vm122_vm0, %v111_v10  ;;  %549 = vmatpush.xpose.msk.msra.mxu1 %vm122_vm0, %v111_v10 }
  0x3d   : > { %550 = vmatpush.xpose.msk.msra.mxu2 %vm122_vm0, %v111_v10  ;;  %551 = vmatpush.xpose.msk.msra.mxu3 %vm122_vm0, %v111_v10  ;;  %v950_v10 = vadd.s32 40, %v907_v43 }
  0x40   : > { %500 = vmatpush.xpose.msk.msra.mxu0 %vm122_vm0, %v110_v11  ;;  %552 = vmatpush.xpose.msk.msra.mxu1 %vm122_vm0, %v110_v11 }
  0x41   : > { %553 = vmatpush.xpose.msk.msra.mxu2 %vm122_vm0, %v110_v11  ;;  %554 = vmatpush.xpose.msk.msra.mxu3 %vm122_vm0, %v110_v11 }
  0x44   : > { %501 = vmatpush.xpose.msk.msra.mxu0 %vm122_vm0, %v109_v12  ;;  %555 = vmatpush.xpose.msk.msra.mxu1 %vm122_vm0, %v109_v12 }
  0x45   : > { %556 = vmatpush.xpose.msk.msra.mxu2 %vm122_vm0, %v109_v12  ;;  %557 = vmatpush.xpose.msk.msra.mxu3 %vm122_vm0, %v109_v12 }
  0x48   : > { %502 = vmatpush.xpose.msk.msra.mxu0 %vm122_vm0, %v108_v13  ;;  %558 = vmatpush.xpose.msk.msra.mxu1 %vm122_vm0, %v108_v13 }
  0x49   : > { %559 = vmatpush.xpose.msk.msra.mxu2 %vm122_vm0, %v108_v13  ;;  %560 = vmatpush.xpose.msk.msra.mxu3 %vm122_vm0, %v108_v13 }
  0x4c   : > { %503 = vmatpush.xpose.msk.msra.mxu0 %vm122_vm0, %v107_v14  ;;  %561 = vmatpush.xpose.msk.msra.mxu1 %vm122_vm0, %v107_v14 }
  0x4d   : > { %562 = vmatpush.xpose.msk.msra.mxu2 %vm122_vm0, %v107_v14  ;;  %563 = vmatpush.xpose.msk.msra.mxu3 %vm122_vm0, %v107_v14 }
  0x50   : > { %504 = vmatpush.xpose.msk.msra.mxu0 %vm122_vm0, %v106_v15  ;;  %564 = vmatpush.xpose.msk.msra.mxu1 %vm122_vm0, %v106_v15 }
  0x51   : > { %565 = vmatpush.xpose.msk.msra.mxu2 %vm122_vm0, %v106_v15  ;;  %566 = vmatpush.xpose.msk.msra.mxu3 %vm122_vm0, %v106_v15 }
  0x53   : > { %505 = vmatmul.msk.f32.vlgmr.msra.gmra.mxu0 %vm122_vm0, %v98_v16  ;;  %507 = vmatmul.msk.f32.vlgmr.msra.gmra.mxu1 %vm122_vm0, %v100_v17 }
  0x54   : > { %509 = vmatmul.msk.f32.vlgmr.msra.gmra.mxu2 %vm122_vm0, %v102_v18  ;;  %511 = vmatmul.msk.f32.vlgmr.msra.gmra.mxu3 %vm122_vm0, %v104_v19 }
  0x5b   : > { %506 = vmatmul.msk.f32.gmra.mxu0 %vm122_vm0, %v99_v20  ;;  %508 = vmatmul.msk.f32.gmra.mxu1 %vm122_vm0, %v101_v21 }
  0x5c   : > { %510 = vmatmul.msk.f32.gmra.mxu2 %vm122_vm0, %v103_v22  ;;  %512 = vmatmul.msk.f32.gmra.mxu3 %vm122_vm0, %v105_v23 }
  0xd0   : > { %v875_v24 = vpop.f32.mrf.mxu0  ;;  %v877_v25 = vpop.f32.mrf.mxu1 }
  0xd1   : > { %v238_v26 = vmul.f32 %v877_v25, %v877_v25  ;;  %v236_v27 = vmul.f32 %v875_v24, %v875_v24 }
  0xd3   : > { %248 = vadd.xlane.f32.xlu1 %v238_v26  ;;  %244 = vadd.xlane.f32.xlu0 %v236_v27 }
  0xd7   : > { %v883_v28 = vpop.f32.mrf.mxu2  ;;  %v885_v29 = vpop.f32.mrf.mxu3 }
  0xd8   : > { %v887_v30 = vpop.f32.mrf.mxu0  ;;  %v889_v31 = vpop.f32.mrf.mxu1  ;;  %v240_v32 = vmul.f32 %v883_v28, %v883_v28  ;;  %v242_v39 = vmul.f32 %v885_v29, %v885_v29 }
  0xd9   : > { %v237_v33 = vmul.f32 %v887_v30, %v887_v30  ;;  %v239_v34 = vmul.f32 %v889_v31, %v889_v31 }
  0xda   : > { %252 = vadd.xlane.f32.xlu2 %v240_v32 }
  0xdb   : > { %250 = vadd.xlane.f32.xlu1 %v239_v34  ;;  %246 = vadd.xlane.f32.xlu0 %v237_v33 }
  0xdf   : > { %v897_v35 = vpop.f32.mrf.mxu2  ;;  %v899_v36 = vpop.f32.mrf.mxu3 }
  0xe0   : > { %v241_v37 = vmul.f32 %v897_v35, %v897_v35  ;;  %v243_v38 = vmul.f32 %v899_v36, %v899_v36 }
  0xe2   : > { %254 = vadd.xlane.f32.xlu2 %v241_v37 }
  0xe3   : > { %258 = vadd.xlane.f32.xlu1 %v243_v38  ;;  %256 = vadd.xlane.f32.xlu0 %v242_v39 }
 0x146   : > { %v249_v41 = vpop.xlane.xlu1 %248  ;;  %v245_v42 = vpop.xlane.xlu0 %244 }
 0x147   : > { %v262_v44 = vmax.f32 %v249_v41, 1e-24  ;;  %v260_v45 = vmax.f32 %v245_v42, 1e-24 }
 0x149   : > { %608 = vrsqrt.f32 %v262_v44  ;;  %vm294_vm5 = vweird.f32 %v262_v44  ;;  %vm274_vm7 = vweird.f32 %v260_v45 }
 0x14a   : > { %610 = vrsqrt.f32 %v260_v45 }
 0x14d   : > { %v253_v48 = vpop.xlane.xlu2 %252 }
 0x14e   : > { %v913_v49 = vmax.f32 %v253_v48, 1e-24  ;;  %v251_v50 = vpop.xlane.xlu1 %250  ;;  %v247_v51 = vpop.xlane.xlu0 %246 }
 0x14f   : > { %v609_v52 = vpop.eup %608  ;;  %v920_v55 = vmax.f32 %v251_v50, 1e-24  ;;  %v922_v56 = vmax.f32 %v247_v51, 1e-24 }
 0x150   : > { %v611_v57 = vpop.eup %610  ;;  %v289_v58 = vmul.f32 %v609_v52, %v262_v44  ;;  %612 = vrsqrt.f32 %v913_v49  ;;  %vm295_vm3 = vweird.f32 %v609_v52  ;;  %vm314_vm10 = vweird.f32 %v913_v49 }
 0x151   : > { %v269_v61 = vmul.f32 %v611_v57, %v260_v45  ;;  %614 = vrsqrt.f32 %v920_v55  ;;  %vm275_vm4 = vweird.f32 %v611_v57  ;;  %vm296_vm6 = vmor %vm294_vm5, %vm295_vm3  ;;  %vm284_vm5 = vweird.f32 %v922_v56 }
 0x152   : > { %v290_v0 = vmul.f32 %v609_v52, %v289_v58  ;;  %616 = vrsqrt.f32 %v922_v56  ;;  %vm276_vm8 = vmor %vm274_vm7, %vm275_vm4  ;;  %vm377_vm7 = vcmp.ne.s32.totalorder %v945_v6, %v918_v54 }
 0x153   : > { %v270_v1 = vmul.f32 %v611_v57, %v269_v61 }
 0x154   : > { %v291_v2 = vmul.f32 0.5, %v290_v0 }
 0x155   : > { %v271_v3 = vmul.f32 0.5, %v270_v1  ;;  %v255_v7 = vpop.xlane.xlu2 %254  ;;  %v364_v1 = vadd.s32 56, %v907_v43 }
 0x156   : > { %v947_v8 = vpop.eup %612  ;;  %v292_v9 = vsub.f32 1.5, %v291_v2  ;;  %v952_v11 = vmax.f32 %v255_v7, 1e-24  ;;  %v259_v12 = vpop.xlane.xlu1 %258 }
 0x157   : > { %v954_v13 = vpop.eup %614  ;;  %v272_v14 = vsub.f32 1.5, %v271_v3  ;;  %v309_v15 = vmul.f32 %v947_v8, %v913_v49  ;;  %v959_v16 = vmax.f32 %v259_v12, 1e-24  ;;  %v257_v23 = vpop.xlane.xlu0 %256  ;;  %vm315_vm12 = vweird.f32 %v947_v8 }
 0x158   : > { %v961_v17 = vpop.eup %616  ;;  %v293_v18 = vmul.f32 %v609_v52, %v292_v9  ;;  %v299_v19 = vmul.f32 %v954_v13, %v920_v55  ;;  %618 = vrsqrt.f32 %v952_v11  ;;  %v986_v40 = vmax.f32 %v257_v23, 1e-24 }
 0x159   : > { %v273_v20 = vmul.f32 %v611_v57, %v272_v14  ;;  %v310_v21 = vmul.f32 %v947_v8, %v309_v15  ;;  %v279_v22 = vmul.f32 %v961_v17, %v922_v56  ;;  %620 = vrsqrt.f32 %v959_v16 }
 0x15a   : > { %v297_v26 = vsel %vm296_vm6, %v609_v52, %v293_v18  ;;  %v300_v27 = vmul.f32 %v954_v13, %v299_v19  ;;  %vm305_vm14 = vweird.f32 %v954_v13  ;;  %vm285_vm3 = vweird.f32 %v961_v17 }
 0x15b   : > { %v350_v32 = vmul.f32 %v297_v26, %v877_v25  ;;  %v277_v33 = vsel %vm276_vm8, %v611_v57, %v273_v20  ;;  %v311_v34 = vmul.f32 0.5, %v310_v21  ;;  %v280_v37 = vmul.f32 %v961_v17, %v279_v22  ;;  %vm286_vm8 = vmor %vm284_vm5, %vm285_vm3 }
 0x15c   : > { %v348_v38 = vmul.f32 %v277_v33, %v875_v24  ;;  %v301_v39 = vmul.f32 0.5, %v300_v27  ;;  %622 = vrsqrt.f32 %v986_v40  ;;  %vm324_vm3 = vweird.f32 %v952_v11 }
 0x15d   : > { %vm386_vm13 = vcmp.gt.f32.partialorder %v350_v32, 0.7  ;;  %v312_v41 = vsub.f32 1.5, %v311_v34  ;;  %v281_v25 = vmul.f32 0.5, %v280_v37 }
 0x15e   : > { %v989_v42 = vpop.eup %618  ;;  %vm394_vm15 = vmand %vm378_vm1, %vm386_vm13  ;;  %vm384_vm0 = vcmp.gt.f32.partialorder %v348_v38, 0.7  ;;  %v302_v44 = vsub.f32 1.5, %v301_v39 }
 0x15f   : > { %v402_v24 = vsel %vm394_vm15, %v350_v32, 0.0  ;;  %vm392_vm4 = vmand %vm376_vm2, %vm384_vm0  ;;  %v313_v45 = vmul.f32 %v947_v8, %v312_v41  ;;  %v282_v46 = vsub.f32 1.5, %v281_v25  ;;  %v319_v48 = vmul.f32 %v989_v42, %v952_v11  ;;  %v1002_v50 = vpop.eup %620 }
 0x160   : > { %410 = vst [vmem:[%s1005_s11 + $0x10] sm:$0xff] %v402_v24  ;;  %v400_v51 = vsel %vm392_vm4, %v348_v38, 0.0  ;;  %vm316_vm1 = vmor %vm314_vm10, %vm315_vm12  ;;  %v303_v52 = vmul.f32 %v954_v13, %v302_v44  ;;  %vm304_vm2 = vweird.f32 %v920_v55  ;;  %v339_v49 = vmul.f32 %v1002_v50, %v959_v16 }
 0x161   : > { %408 = vst [vmem:[%s1005_s11] sm:$0xff] %v400_v51  ;;  %v317_v53 = vsel %vm316_vm1, %v947_v8, %v313_v45  ;;  %vm306_vm6 = vmor %vm304_vm2, %vm305_vm14  ;;  %v283_v57 = vmul.f32 %v961_v17, %v282_v46  ;;  %v320_v58 = vmul.f32 %v989_v42, %v319_v48  ;;  %v371_v55 = vadd.s32 %v911_v47, %v950_v10 }
 0x162   : > { %v352_v59 = vmul.f32 %v317_v53, %v883_v28  ;;  %v307_v60 = vsel %vm306_vm6, %v954_v13, %v303_v52  ;;  %v340_v63 = vmul.f32 %v1002_v50, %v339_v49  ;;  %v623_v28 = vpop.eup %622  ;;  %vm325_vm12 = vweird.f32 %v989_v42 }
 0x163   : > { %v351_v56 = vmul.f32 %v307_v60, %v889_v31  ;;  %v287_v61 = vsel %vm286_vm8, %v961_v17, %v283_v57  ;;  %v321_v62 = vmul.f32 0.5, %v320_v58  ;;  %v329_v3 = vmul.f32 %v623_v28, %v986_v40 }
 0x164   : > { %vm388_vm10 = vcmp.gt.f32.partialorder %v352_v59, 0.7  ;;  %v349_v0 = vmul.f32 %v287_v61, %v887_v30  ;;  %v341_v2 = vmul.f32 0.5, %v340_v63  ;;  %vm345_vm4 = vweird.f32 %v1002_v50 }
 0x165   : > { %vm396_vm13 = vmand %vm380_vm9, %vm388_vm10  ;;  %vm387_vm14 = vcmp.gt.f32.partialorder %v351_v56, 0.7  ;;  %v322_v31 = vsub.f32 1.5, %v321_v62  ;;  %v330_v9 = vmul.f32 %v623_v28, %v329_v3  ;;  %v373_v10 = vadd.s32 %v911_v47, %v364_v1 }
 0x166   : > { %v404_v7 = vsel %vm396_vm13, %v352_v59, 0.0  ;;  %vm395_vm15 = vmand %vm379_vm11, %vm387_vm14  ;;  %vm385_vm0 = vcmp.gt.f32.partialorder %v349_v0, 0.7  ;;  %v342_v8 = vsub.f32 1.5, %v341_v2  ;;  %v363_v11 = vadd.s32 48, %v907_v43 }
 0x167   : > { %412 = vst [vmem:[%s1005_s11 + $0x20] sm:$0xff] %v404_v7  ;;  %v403_v30 = vsel %vm395_vm15, %v351_v56, 0.0  ;;  %vm393_vm9 = vmand %vm377_vm7, %vm385_vm0  ;;  %v323_v4 = vmul.f32 %v989_v42, %v322_v31  ;;  %vm344_vm1 = vweird.f32 %v959_v16  ;;  %v331_v13 = vmul.f32 0.5, %v330_v9 }
 0x168   : > { %411 = vst [vmem:[%s1005_s11 + $0x18] sm:$0xff] %v403_v30  ;;  %v401_v5 = vsel %vm393_vm9, %v349_v0, 0.0  ;;  %vm326_vm11 = vmor %vm324_vm3, %vm325_vm12  ;;  %v343_v6 = vmul.f32 %v1002_v50, %v342_v8  ;;  %vm381_vm2 = vcmp.ne.s32.totalorder %v371_v55, %v918_v54  ;;  %vm335_vm6 = vweird.f32 %v623_v28 }
 0x169   : > { %409 = vst [vmem:[%s1005_s11 + $0x8] sm:$0xff] %v401_v5  ;;  %v327_v12 = vsel %vm326_vm11, %v989_v42, %v323_v4  ;;  %vm346_vm5 = vmor %vm344_vm1, %vm345_vm4  ;;  %v332_v15 = vsub.f32 1.5, %v331_v13  ;;  %vm383_vm8 = vcmp.ne.s32.totalorder %v373_v10, %v918_v54  ;;  %vm334_vm12 = vweird.f32 %v986_v40 }
 0x16a   : > { %v353_v14 = vmul.f32 %v327_v12, %v897_v35  ;;  %v347_v43 = vsel %vm346_vm5, %v1002_v50, %v343_v6  ;;  %v372_v35 = vadd.s32 %v911_v47, %v363_v11  ;;  %vm336_vm14 = vmor %vm334_vm12, %vm335_vm6 }
 0x16b   : > { %v355_v16 = vmul.f32 %v347_v43, %v899_v36  ;;  %v333_v17 = vmul.f32 %v623_v28, %v332_v15 }
 0x16c   : > { %vm389_vm7 = vcmp.gt.f32.partialorder %v353_v14, 0.7  ;;  %vm382_vm0 = vcmp.ne.s32.totalorder %v372_v35, %v918_v54 }
 0x16d   : > { %vm397_vm10 = vmand %vm381_vm2, %vm389_vm7  ;;  %vm391_vm13 = vcmp.gt.f32.partialorder %v355_v16, 0.7  ;;  %v337_v19 = vsel %vm336_vm14, %v623_v28, %v333_v17 }
 0x16e   : > { %v405_v18 = vsel %vm397_vm10, %v353_v14, 0.0  ;;  %vm399_vm15 = vmand %vm383_vm8, %vm391_vm13  ;;  %v354_v36 = vmul.f32 %v337_v19, %v885_v29 }
 0x16f   : > { %413 = vst [vmem:[%s1005_s11 + $0x28] sm:$0xff] %v405_v18  ;;  %v407_v20 = vsel %vm399_vm15, %v355_v16, 0.0 }
 0x170   : > { %415 = vst [vmem:[%s1005_s11 + $0x38] sm:$0xff] %v407_v20  ;;  %vm390_vm3 = vcmp.gt.f32.partialorder %v354_v36, 0.7 }
 0x171   : > { %vm398_vm4 = vmand %vm382_vm0, %vm390_vm3 }
 0x172   : > { %v406_v47 = vsel %vm398_vm4, %v354_v36, 0.0 }
 0x173   : > { %414 = vst [vmem:[%s1005_s11 + $0x30] sm:$0xff] %v406_v47 }
 0x174   : > { %651 = shalt.err (!%p648_p2)
}
 0x175   : > { %s688_s29 = smov 128   ;;  %s689_s30 = smov 8  }
 0x176   : > { %567 = dma.vmem_to_hbm [thread:$0]  (%p737_p5), %s430_s20, 1024, %s432_s19, %s417_s21, %s688_s29, %s688_s29, %s689_s30  }
 0x177 PF: > { %p573_p3 = scmp.ge.s32.totalorder %s686_s9, 2  ;;  %s446_s2 = sand.u32 1, %s674_s6  }
 0x178   : > { %s447_s3 = scalar_lea.sflag [#allocation3], %s446_s2 }
 0x179   : > { %p570_p4 = pnand %p573_p3, %p741_p6 }
 0x17b   : > { %p571_p7 = pneg %p570_p4 }
 0x17d   : > { %669 = dma.done.wait (%p571_p7), %s447_s3, 1024  }
 0x17e   : > { %671 = vsyncadd (%p571_p7), %s447_s3, 4294966272  ;;  %p11_p8 = scmp.ge.s32.totalorder %s723_s12, 4   ;;  %s1115_s6 = smov %s678_s7 }
 0x17f   : > { %s1116_s7 = smov %s682_s8  ;;  %s1117_s8 = smov %s735_s15 }
 0x180   : > { %s1118_s9 = smov %s723_s12  ;;  %13 = sbr.rel (!%p11_p8) target bundleno = 3 (0x3), region = 57 }
 0x185   :  { %453 = vsyncpa [#allocation3], 1 }
 0x186   :  { %455 = vsyncpa [#allocation3 + $0x1], 1 }

</bundles_post_ra>
